<compile_context>
chip_gen: v5e
topology: v5e:2x2
jax: 0.10.0
libtpu: 0.0.40
codegen_flags: <defaults>
</compile_context>

<pallas_src>
import jax
import jax.numpy as jnp
from jax.experimental import pallas as pl
from jax.experimental.pallas import tpu as pltpu


def _mlp_kernel(x_ref, w1_ref, b1_ref, w2_ref, b2_ref, w3_ref, b3_ref,
                w4_ref, b4_ref, o_ref):
    # Transposed dataflow: activations are (features, TB); batch is on lanes.
    x = x_ref[...]                                             # (1, TB)

    # fc1 (K=1): VPU broadcast multiply instead of a rank-1 MXU matmul.
    h = jnp.maximum(w1_ref[...] * x + b1_ref[...], 0.0)       # (64, TB)

    # fc2 / fc3: (64,64) @ (64,TB) -> (64,TB); batch fills the MXU lane axis.
    h = jnp.maximum(
        jnp.dot(w2_ref[...], h, preferred_element_type=jnp.float32)
        + b2_ref[...], 0.0)                                    # (64, TB)
    h = jnp.maximum(
        jnp.dot(w3_ref[...], h, preferred_element_type=jnp.float32)
        + b3_ref[...], 0.0)                                    # (64, TB)

    # fc4: (1,64) @ (64,TB) -> (1,TB); lane-dense result and store.
    o_ref[...] = (jnp.dot(w4_ref[...], h, preferred_element_type=jnp.float32)
                  + b4_ref[...])                               # (1, TB)


def _round_up(n, m):
    return ((n + m - 1) // m) * m


def simple_1d_net(x, params, *, tb=4096):
    """x: (B, 1) float32; params: feature-major (torch-layout) weights/biases."""
    B = x.shape[0]

    # Lane tile: multiple of 128, large by default to amortize per-step
    # overhead, but never larger than the (128-aligned) batch.
    TB = _round_up(min(tb, _round_up(B, 128)), 128)
    Bp = _round_up(B, TB)

    # Lane-dense presentation of x: (B,1) -> (1,Bp) (a reshape, no data shuffle).
    x_t = jnp.reshape(x.astype(jnp.float32), (1, B))
    if Bp != B:
        x_t = jnp.pad(x_t, ((0, 0), (0, Bp - B)))

    grid = (Bp // TB,)

    io_spec = pl.BlockSpec((1, TB), lambda i: (0, i))

    def const_spec(arr):
        return pl.BlockSpec(arr.shape, lambda i: (0, 0))

    weight_args = (params["w1"], params["b1"],
                   params["w2"], params["b2"],
                   params["w3"], params["b3"],
                   params["w4"], params["b4"])

    # Advisory cost estimate for XLA's scheduler.
    flops = Bp * (2 * 64 + 2 * 64 * 64 + 2 * 64 * 64 + 2 * 64)
    weight_bytes = sum(int(w.size) * 4 for w in weight_args)
    cost = pl.CostEstimate(flops=flops, transcendentals=0,
                           bytes_accessed=2 * 4 * Bp + weight_bytes)

    out_t = pl.pallas_call(
        _mlp_kernel,
        out_shape=jax.ShapeDtypeStruct((1, Bp), jnp.float32),
        grid_spec=pltpu.PrefetchScalarGridSpec(
            num_scalar_prefetch=0,
            grid=grid,
            in_specs=[io_spec] + [const_spec(w) for w in weight_args],
            out_specs=io_spec,
        ),
        compiler_params=pltpu.CompilerParams(
            dimension_semantics=("parallel",),   # megacore sharding on v7x
        ),
        cost_estimate=cost,
    )(x_t, *weight_args)

    return jnp.reshape(out_t[0, :B], (B, 1))


def init_params(key):
    """Deterministic init mimicking torch.nn.Linear default U[-1/sqrt(fan_in), +].

    Torch/feature-major layout: weights (out_features, in_features),
    biases (out_features, 1), matching y = W @ h + b in the transposed dataflow.
    """
    dims = [(1, 64), (64, 64), (64, 64), (64, 1)]
    params = {}
    for i, (fan_in, fan_out) in enumerate(dims, start=1):
        key, kw, kb = jax.random.split(key, 3)
        bound = 1.0 / jnp.sqrt(jnp.float32(fan_in))
        params[f"w{i}"] = jax.random.uniform(
            kw, (fan_out, fan_in), jnp.float32, -bound, bound)
        params[f"b{i}"] = jax.random.uniform(
            kb, (fan_out, 1), jnp.float32, -bound, bound)
    return params


def _reference(x, params):
    # Row-major reference (matches torch: y = x @ W.T + b).
    h = jnp.maximum(x @ params["w1"].T + params["b1"].T, 0.0)
    h = jnp.maximum(h @ params["w2"].T + params["b2"].T, 0.0)
    h = jnp.maximum(h @ params["w3"].T + params["b3"].T, 0.0)
    return h @ params["w4"].T + params["b4"].T


if __name__ == "__main__":
    key = jax.random.PRNGKey(0)
    key, kx1, kx2 = jax.random.split(key, 3)
    params = init_params(key)

    # Small batch: single 128-wide tile, padded columns discarded.
    B_small = 8
    x_small = jax.random.normal(kx1, (B_small, 1), jnp.float32)
    out_small = jax.block_until_ready(simple_1d_net(x_small, params))
    ref_small = _reference(x_small, params)
    assert out_small.shape == (B_small, 1)
    assert jnp.allclose(out_small, ref_small, atol=1e-5, rtol=1e-5)

    # Larger, non-multiple batch with a small tile: exercises the multi-step
    # grid, pipelining, padding, and megacore-parallel axis.
    B_big = 1000
    x_big = jax.random.normal(kx2, (B_big, 1), jnp.float32)
    out_big = jax.block_until_ready(simple_1d_net(x_big, params, tb=256))
    ref_big = _reference(x_big, params)
    assert out_big.shape == (B_big, 1)
    assert jnp.allclose(out_big, ref_big, atol=1e-5, rtol=1e-5)

    # Default fat-tile path (single grid step at this size).
    out_def = jax.block_until_ready(simple_1d_net(x_big, params))
    assert jnp.allclose(out_def, ref_big, atol=1e-5, rtol=1e-5)

    print("KERNEL_OK")
</pallas_src>

<mosaic_0001>
module attributes {stable_mosaic.version = 11 : i64} {
  func.func @_mlp_kernel(%arg0: i32, %arg1: memref<1x128xf32, #tpu.memory_space<vmem>>, %arg2: memref<64x1xf32, #tpu.memory_space<vmem>>, %arg3: memref<64x1xf32, #tpu.memory_space<vmem>>, %arg4: memref<64x64xf32, #tpu.memory_space<vmem>>, %arg5: memref<64x1xf32, #tpu.memory_space<vmem>>, %arg6: memref<64x64xf32, #tpu.memory_space<vmem>>, %arg7: memref<64x1xf32, #tpu.memory_space<vmem>>, %arg8: memref<1x64xf32, #tpu.memory_space<vmem>>, %arg9: memref<1x1xf32, #tpu.memory_space<vmem>>, %arg10: memref<1x128xf32, #tpu.memory_space<vmem>>) attributes {dimension_semantics = [#tpu.dimension_semantics<parallel>], iteration_bounds = array<i64: 1>, scalar_prefetch = 0 : i64, scratch_operands = 0 : i64, tpu.core_type = #tpu.core_type<tc>, window_params = [{transform_indices = @transform_0, window_bounds = array<i64: 1, 128>}, {pipeline_mode = #tpu.pipeline_mode<synchronous>, transform_indices = @transform_1, window_bounds = array<i64: 64, 1>}, {pipeline_mode = #tpu.pipeline_mode<synchronous>, transform_indices = @transform_2, window_bounds = array<i64: 64, 1>}, {pipeline_mode = #tpu.pipeline_mode<synchronous>, transform_indices = @transform_3, window_bounds = array<i64: 64, 64>}, {pipeline_mode = #tpu.pipeline_mode<synchronous>, transform_indices = @transform_4, window_bounds = array<i64: 64, 1>}, {pipeline_mode = #tpu.pipeline_mode<synchronous>, transform_indices = @transform_5, window_bounds = array<i64: 64, 64>}, {pipeline_mode = #tpu.pipeline_mode<synchronous>, transform_indices = @transform_6, window_bounds = array<i64: 64, 1>}, {pipeline_mode = #tpu.pipeline_mode<synchronous>, transform_indices = @transform_7, window_bounds = array<i64: 1, 64>}, {pipeline_mode = #tpu.pipeline_mode<synchronous>, transform_indices = @transform_8, window_bounds = array<i64: 1, 1>}, {transform_indices = @transform_9, window_bounds = array<i64: 1, 128>}]} {
    %c0 = arith.constant 0 : index
    %c0_0 = arith.constant 0 : index
    %0 = vector.load %arg1[%c0, %c0_0] : memref<1x128xf32, #tpu.memory_space<vmem>>, vector<1x128xf32>
    %c0_1 = arith.constant 0 : index
    %c0_2 = arith.constant 0 : index
    %1 = vector.load %arg2[%c0_1, %c0_2] : memref<64x1xf32, #tpu.memory_space<vmem>>, vector<64x1xf32>
    %2 = vector.broadcast %1 : vector<64x1xf32> to vector<64x128xf32>
    %3 = vector.broadcast %0 : vector<1x128xf32> to vector<64x128xf32>
    %4 = arith.mulf %2, %3 : vector<64x128xf32>
    %c0_3 = arith.constant 0 : index
    %c0_4 = arith.constant 0 : index
    %5 = vector.load %arg3[%c0_3, %c0_4] : memref<64x1xf32, #tpu.memory_space<vmem>>, vector<64x1xf32>
    %6 = vector.broadcast %5 : vector<64x1xf32> to vector<64x128xf32>
    %7 = arith.addf %4, %6 : vector<64x128xf32>
    %cst = arith.constant 0.000000e+00 : f32
    %8 = vector.broadcast %cst : f32 to vector<64x128xf32>
    %9 = arith.maximumf %7, %8 : vector<64x128xf32>
    %c0_5 = arith.constant 0 : index
    %c0_6 = arith.constant 0 : index
    %10 = vector.load %arg4[%c0_5, %c0_6] : memref<64x64xf32, #tpu.memory_space<vmem>>, vector<64x64xf32>
    %cst_7 = arith.constant dense<0.000000e+00> : vector<64x128xf32>
    %11 = tpu.matmul %10, %9, %cst_7 {dimension_numbers = #tpu.dot_dimension_numbers<[1], [0], [0], [1], [0, 0, 1, 1], [], []>} : vector<64x64xf32>, vector<64x128xf32>, vector<64x128xf32> -> vector<64x128xf32>
    %c0_8 = arith.constant 0 : index
    %c0_9 = arith.constant 0 : index
    %12 = vector.load %arg5[%c0_8, %c0_9] : memref<64x1xf32, #tpu.memory_space<vmem>>, vector<64x1xf32>
    %13 = vector.broadcast %12 : vector<64x1xf32> to vector<64x128xf32>
    %14 = arith.addf %11, %13 : vector<64x128xf32>
    %cst_10 = arith.constant 0.000000e+00 : f32
    %15 = vector.broadcast %cst_10 : f32 to vector<64x128xf32>
    %16 = arith.maximumf %14, %15 : vector<64x128xf32>
    %c0_11 = arith.constant 0 : index
    %c0_12 = arith.constant 0 : index
    %17 = vector.load %arg6[%c0_11, %c0_12] : memref<64x64xf32, #tpu.memory_space<vmem>>, vector<64x64xf32>
    %cst_13 = arith.constant dense<0.000000e+00> : vector<64x128xf32>
    %18 = tpu.matmul %17, %16, %cst_13 {dimension_numbers = #tpu.dot_dimension_numbers<[1], [0], [0], [1], [0, 0, 1, 1], [], []>} : vector<64x64xf32>, vector<64x128xf32>, vector<64x128xf32> -> vector<64x128xf32>
    %c0_14 = arith.constant 0 : index
    %c0_15 = arith.constant 0 : index
    %19 = vector.load %arg7[%c0_14, %c0_15] : memref<64x1xf32, #tpu.memory_space<vmem>>, vector<64x1xf32>
    %20 = vector.broadcast %19 : vector<64x1xf32> to vector<64x128xf32>
    %21 = arith.addf %18, %20 : vector<64x128xf32>
    %cst_16 = arith.constant 0.000000e+00 : f32
    %22 = vector.broadcast %cst_16 : f32 to vector<64x128xf32>
    %23 = arith.maximumf %21, %22 : vector<64x128xf32>
    %c0_17 = arith.constant 0 : index
    %c0_18 = arith.constant 0 : index
    %24 = vector.load %arg8[%c0_17, %c0_18] : memref<1x64xf32, #tpu.memory_space<vmem>>, vector<1x64xf32>
    %cst_19 = arith.constant dense<0.000000e+00> : vector<1x128xf32>
    %25 = tpu.matmul %24, %23, %cst_19 {dimension_numbers = #tpu.dot_dimension_numbers<[1], [0], [0], [1], [0, 0, 1, 1], [], []>} : vector<1x64xf32>, vector<64x128xf32>, vector<1x128xf32> -> vector<1x128xf32>
    %c0_20 = arith.constant 0 : index
    %c0_21 = arith.constant 0 : index
    %26 = vector.load %arg9[%c0_20, %c0_21] : memref<1x1xf32, #tpu.memory_space<vmem>>, vector<1x1xf32>
    %27 = vector.broadcast %26 : vector<1x1xf32> to vector<1x128xf32>
    %28 = arith.addf %25, %27 : vector<1x128xf32>
    %c0_22 = arith.constant 0 : index
    %c0_23 = arith.constant 0 : index
    %29 = vector.load %arg10[%c0_22, %c0_23] : memref<1x128xf32, #tpu.memory_space<vmem>>, vector<1x128xf32>
    tpu.vector_store %arg10[%c0_22, %c0_23], %28 {strides = array<i32>} : memref<1x128xf32, #tpu.memory_space<vmem>>, vector<1x128xf32>,
    return
  }
  func.func @transform_0(%arg0: i32) -> (i32, i32) {
    %c0_i32 = arith.constant 0 : i32
    %c0_i32_0 = arith.constant 0 : i32
    return %c0_i32, %arg0 : i32, i32
  }
  func.func @transform_1(%arg0: i32) -> (i32, i32) {
    %c0_i32 = arith.constant 0 : i32
    %c0_i32_0 = arith.constant 0 : i32
    %c0_i32_1 = arith.constant 0 : i32
    return %c0_i32, %c0_i32_0 : i32, i32
  }
  func.func @transform_2(%arg0: i32) -> (i32, i32) {
    %c0_i32 = arith.constant 0 : i32
    %c0_i32_0 = arith.constant 0 : i32
    %c0_i32_1 = arith.constant 0 : i32
    return %c0_i32, %c0_i32_0 : i32, i32
  }
  func.func @transform_3(%arg0: i32) -> (i32, i32) {
    %c0_i32 = arith.constant 0 : i32
    %c0_i32_0 = arith.constant 0 : i32
    %c0_i32_1 = arith.constant 0 : i32
    return %c0_i32, %c0_i32_0 : i32, i32
  }
  func.func @transform_4(%arg0: i32) -> (i32, i32) {
    %c0_i32 = arith.constant 0 : i32
    %c0_i32_0 = arith.constant 0 : i32
    %c0_i32_1 = arith.constant 0 : i32
    return %c0_i32, %c0_i32_0 : i32, i32
  }
  func.func @transform_5(%arg0: i32) -> (i32, i32) {
    %c0_i32 = arith.constant 0 : i32
    %c0_i32_0 = arith.constant 0 : i32
    %c0_i32_1 = arith.constant 0 : i32
    return %c0_i32, %c0_i32_0 : i32, i32
  }
  func.func @transform_6(%arg0: i32) -> (i32, i32) {
    %c0_i32 = arith.constant 0 : i32
    %c0_i32_0 = arith.constant 0 : i32
    %c0_i32_1 = arith.constant 0 : i32
    return %c0_i32, %c0_i32_0 : i32, i32
  }
  func.func @transform_7(%arg0: i32) -> (i32, i32) {
    %c0_i32 = arith.constant 0 : i32
    %c0_i32_0 = arith.constant 0 : i32
    %c0_i32_1 = arith.constant 0 : i32
    return %c0_i32, %c0_i32_0 : i32, i32
  }
  func.func @transform_8(%arg0: i32) -> (i32, i32) {
    %c0_i32 = arith.constant 0 : i32
    %c0_i32_0 = arith.constant 0 : i32
    %c0_i32_1 = arith.constant 0 : i32
    return %c0_i32, %c0_i32_0 : i32, i32
  }
  func.func @transform_9(%arg0: i32) -> (i32, i32) {
    %c0_i32 = arith.constant 0 : i32
    %c0_i32_0 = arith.constant 0 : i32
    return %c0_i32, %arg0 : i32, i32
  }
}

</mosaic_0001>

<bundles_post_ra>
// kernel: tpu_custom_call.1
= control target key start
LH: loop header
LB: loop body
LE: loop exit
PB: predicated region body
PF: predicated region fallthrough
CT: control target
= control target key end

     0   :  { %s756_s0 = inlined_call_operand.vmem [shape: f32[1,128], index: 0, kind: input, shape index: {}]   ;;  %s757_s1 = inlined_call_operand.vmem [shape: f32[64,1], index: 1, kind: input, shape index: {}]   ;;  %s758_s2 = inlined_call_operand.vmem [shape: f32[64,1], index: 2, kind: input, shape index: {}]   ;;  %s759_s3 = inlined_call_operand.vmem [shape: f32[64,64], index: 3, kind: input, shape index: {}]   ;;  %s760_s4 = inlined_call_operand.vmem [shape: f32[64,1], index: 4, kind: input, shape index: {}]   ;;  %s761_s5 = inlined_call_operand.vmem [shape: f32[64,64], index: 5, kind: input, shape index: {}]   ;;  %s762_s6 = inlined_call_operand.vmem [shape: f32[64,1], index: 6, kind: input, shape index: {}]   ;;  %s763_s7 = inlined_call_operand.vmem [shape: f32[1,64], index: 7, kind: input, shape index: {}]   ;;  %s764_s8 = inlined_call_operand.<no memory space> [shape: f32[1,1], index: 8, kind: input, shape index: {}]   ;;  %s765_s9 = inlined_call_operand.hbm [shape: f32[1,128], index: 9, kind: output, shape index: {}]  }
   0x1   :  { %v14_v0 = vstv %s764_s8 }
   0x2   :  { %15 = vst [vmem:[#allocation2] sm:$0x1] %v14_v0 }
   0x3   :  { %v101_v1 = vld [vmem:[%s758_s2 + $0x30] sm:$0xff]  ;;  %v102_v2 = vld [vmem:[%s758_s2 + $0x38] sm:$0xff]  ;;  %v531_v4 = vmov 0  }
   0x4   :  { %v43_v3 = vld [vmem:[%s757_s1 + $0x38] sm:$0xff]  ;;  %503 = vset.pattern.permute.xlu2 %v531_v4  ;;  %502 = vset.pattern.permute.xlu1 %v531_v4 }
   0x5   :  { %501 = vset.pattern.permute.xlu0 %v531_v4  ;;  %135 = vperm.xlu2 %503, %v101_v1  }
   0x6   :  { %140 = vperm.xlu1 %502, %v102_v2   ;;  %81 = vperm.xlu0 %501, %v43_v3  }
   0x7   :  { %16 = vsyncpa [#allocation4], 0  ;;  %v40_v5 = vld [vmem:[%s757_s1 + $0x20] sm:$0xff]  ;;  %v42_v6 = vld [vmem:[%s757_s1 + $0x30] sm:$0xff]  ;;  %vm215_vm0 = vcmask 523264   ;;  %s532_s30 = smov [#allocation3]  }
   0x8   :  { %v41_v7 = vld [vmem:[%s757_s1 + $0x28] sm:$0xff]  ;;  %v99_v8 = vld [vmem:[%s758_s2 + $0x20] sm:$0xff]  ;;  %v39_v10 = vld [vmem:[%s757_s1 + $0x18] sm:$0xff]  ;;  %s455_s10 = sshll.u32 %s532_s30, 4  ;;  %s457_s13 = sshll.u32 %s765_s9, 4  ;;  %s456_s10 = int_to_ptr.vmem [resolvable:$true] %s455_s10  ;;  %s458_s13 = int_to_ptr.hbm [resolvable:$true] %s457_s13 }
   0x9   :  { %v100_v9 = vld [vmem:[%s758_s2 + $0x28] sm:$0xff]  ;;  %v98_v12 = vld [vmem:[%s758_s2 + $0x18] sm:$0xff]  ;;  %v38_v13 = vld [vmem:[%s757_s1 + $0x10] sm:$0xff] }
   0xa   :  { %v37_v11 = vld [vmem:[%s757_s1 + $0x8] sm:$0xff]  ;;  %v97_v15 = vld [vmem:[%s758_s2 + $0x10] sm:$0xff]  ;;  %v36_v16 = vld [vmem:[%s757_s1] sm:$0xff] }
   0xb   :  { %v96_v14 = vld [vmem:[%s758_s2 + $0x8] sm:$0xff]  ;;  %v173_v17 = vld [vmem:[%s760_s4 + $0x30] sm:$0xff]  ;;  %v95_v18 = vld [vmem:[%s758_s2] sm:$0xff] }
   0xc   :  { %v174_v19 = vld [vmem:[%s760_s4 + $0x38] sm:$0xff]  ;;  %v172_v21 = vld [vmem:[%s760_s4 + $0x28] sm:$0xff]  ;;  %v171_v22 = vld [vmem:[%s760_s4 + $0x20] sm:$0xff] }
   0xd   :  { %66 = vperm.xlu2 %503, %v40_v5   ;;  %v170_v20 = vld [vmem:[%s760_s4 + $0x18] sm:$0xff]  ;;  %v167_v23 = vld [vmem:[%s760_s4] sm:$0xff]  ;;  %v169_v24 = vld [vmem:[%s760_s4 + $0x10] sm:$0xff] }
   0xe   :  { %76 = vperm.xlu0 %501, %v42_v6   ;;  %71 = vperm.xlu1 %502, %v41_v7   ;;  %v168_v25 = vld [vmem:[%s760_s4 + $0x8] sm:$0xff]  ;;  %v304_v27 = vld [vmem:[%s762_s6 + $0x38] sm:$0xff]  ;;  %v303_v28 = vld [vmem:[%s762_s6 + $0x30] sm:$0xff] }
   0xf   :  { %v302_v26 = vld [vmem:[%s762_s6 + $0x28] sm:$0xff]  ;;  %v299_v29 = vld [vmem:[%s762_s6 + $0x10] sm:$0xff]  ;;  %v301_v30 = vld [vmem:[%s762_s6 + $0x20] sm:$0xff] }
  0x10   :  { %v300_v31 = vld [vmem:[%s762_s6 + $0x18] sm:$0xff]  ;;  %v419_v32 = vld [vmem:[#allocation2] sm:$0x1]  ;;  %v298_v33 = vld [vmem:[%s762_s6 + $0x8] sm:$0xff] }
  0x11   :  { %v297_v34 = vld [vmem:[%s762_s6] sm:$0xff] }
  0x12   :  { %v504_v36 = vld [vmem:[%s756_s0] ss:$0 sm:$0xff] }
  0x15   :  { %125 = vperm.xlu2 %503, %v99_v8  }
  0x16   :  { %130 = vperm.xlu0 %501, %v100_v9   ;;  %61 = vperm.xlu1 %502, %v39_v10  }
  0x1d   :  { %51 = vperm.xlu2 %503, %v37_v11  }
  0x1e   :  { %120 = vperm.xlu1 %502, %v98_v12   ;;  %56 = vperm.xlu0 %501, %v38_v13   ;;  %v159_v12 = vld [vmem:[%s759_s3] sm:$0xff]  ;;  %v164_v13 = vld [vmem:[%s759_s3 + $0x28] sm:$0xff] }
  0x25   :  { %110 = vperm.xlu2 %503, %v96_v14   ;;  %v160_v14 = vld [vmem:[%s759_s3 + $0x8] sm:$0xff] }
  0x26   :  { %115 = vperm.xlu0 %501, %v97_v15   ;;  %46 = vperm.xlu1 %502, %v36_v16   ;;  %v165_v15 = vld [vmem:[%s759_s3 + $0x30] sm:$0xff] }
  0x27   :  { %v161_v16 = vld [vmem:[%s759_s3 + $0x10] sm:$0xff] }
  0x2d   :  { %207 = vperm.xlu2 %503, %v173_v17   ;;  %v166_v17 = vld [vmem:[%s759_s3 + $0x38] sm:$0xff] }
  0x2e   :  { %105 = vperm.xlu0 %501, %v95_v18   ;;  %212 = vperm.xlu1 %502, %v174_v19   ;;  %v162_v18 = vld [vmem:[%s759_s3 + $0x18] sm:$0xff]  ;;  %v163_v19 = vld [vmem:[%s759_s3 + $0x20] sm:$0xff] }
  0x35   :  { %192 = vperm.xlu2 %503, %v170_v20  }
  0x36   :  { %202 = vperm.xlu0 %501, %v172_v21   ;;  %197 = vperm.xlu1 %502, %v171_v22  }
  0x3d   :  { %177 = vperm.xlu2 %503, %v167_v23  }
  0x3e   :  { %187 = vperm.xlu0 %501, %v169_v24   ;;  %182 = vperm.xlu1 %502, %v168_v25  }
  0x45   :  { %332 = vperm.xlu2 %503, %v302_v26  }
  0x46   :  { %342 = vperm.xlu0 %501, %v304_v27   ;;  %337 = vperm.xlu1 %502, %v303_v28  }
  0x4d   :  { %317 = vperm.xlu2 %503, %v299_v29  }
  0x4e   :  { %327 = vperm.xlu0 %501, %v301_v30   ;;  %322 = vperm.xlu1 %502, %v300_v31  }
  0x55   :  { %422 = vperm.xlu2 %503, %v419_v32  }
  0x56   :  { %312 = vperm.xlu0 %501, %v298_v33   ;;  %307 = vperm.xlu1 %502, %v297_v34  }
  0x5f   :  { %v136_v35 = vpop.permute.xlu2 %135 }
  0x67   :  { %v67_v37 = vpop.permute.xlu2 %66 }
  0x68   :  { %v91_v48 = vmul.f32 %v504_v36, %v67_v37 }
  0x6f   :  { %v126_v46 = vpop.permute.xlu2 %125 }
  0x70   :  { %v147_v53 = vadd.f32 %v126_v46, %v91_v48 }
  0x72   :  { %v155_v57 = vmax.f32 %v147_v53, 0.0  ;;  %v294_v53 = vld [vmem:[%s761_s5 + $0x28] sm:$0xff] }
  0x77   :  { %v52_v56 = vpop.permute.xlu2 %51 }
  0x78   :  { %v141_v38 = vpop.permute.xlu1 %140  ;;  %v82_v39 = vpop.permute.xlu0 %81  ;;  %v88_v63 = vmul.f32 %v504_v36, %v52_v56  ;;  %v291_v56 = vld [vmem:[%s761_s5 + $0x10] sm:$0xff] }
  0x79   :  { %v94_v40 = vmul.f32 %v504_v36, %v82_v39 }
  0x7b   :  { %v150_v41 = vadd.f32 %v141_v38, %v94_v40 }
  0x7d   :  { %v158_v42 = vmax.f32 %v150_v41, 0.0 }
  0x7f   :  { %248 = vmatpush.msra.mxu0 %v158_v42  ;;  %483 = vmatpush.msra.mxu3 %v158_v42  ;;  %v111_v0 = vpop.permute.xlu2 %110 }
  0x80   :  { %v77_v43 = vpop.permute.xlu0 %76  ;;  %v72_v44 = vpop.permute.xlu1 %71  ;;  %v144_v3 = vadd.f32 %v111_v0, %v88_v63 }
  0x81   :  { %v93_v45 = vmul.f32 %v504_v36, %v77_v43  ;;  %v92_v50 = vmul.f32 %v504_v36, %v72_v44 }
  0x82   :  { %v152_v7 = vmax.f32 %v144_v3, 0.0 }
  0x83   :  { %v149_v47 = vadd.f32 %v136_v35, %v93_v45 }
  0x85   :  { %v157_v49 = vmax.f32 %v149_v47, 0.0 }
  0x87   :  { %249 = vmatpush.msra.mxu0 %v157_v49  ;;  %484 = vmatpush.msra.mxu3 %v157_v49  ;;  %v208_v26 = vpop.permute.xlu2 %207 }
  0x88   :  { %v131_v51 = vpop.permute.xlu0 %130  ;;  %v62_v52 = vpop.permute.xlu1 %61 }
  0x89   :  { %v148_v54 = vadd.f32 %v131_v51, %v92_v50  ;;  %v90_v58 = vmul.f32 %v504_v36, %v62_v52  ;;  %v289_v52 = vld [vmem:[%s761_s5] sm:$0xff] }
  0x8b   :  { %v156_v55 = vmax.f32 %v148_v54, 0.0  ;;  %v290_v54 = vld [vmem:[%s761_s5 + $0x8] sm:$0xff] }
  0x8d   :  { %250 = vmatpush.msra.mxu0 %v156_v55  ;;  %485 = vmatpush.msra.mxu3 %v156_v55  ;;  %v295_v55 = vld [vmem:[%s761_s5 + $0x30] sm:$0xff] }
  0x8f   :  { %251 = vmatpush.msra.mxu0 %v155_v57  ;;  %486 = vmatpush.msra.mxu3 %v155_v57  ;;  %v296_v57 = vld [vmem:[%s761_s5 + $0x38] sm:$0xff] }
  0x90   :  { %v121_v59 = vpop.permute.xlu1 %120  ;;  %v57_v60 = vpop.permute.xlu0 %56 }
  0x91   :  { %v146_v61 = vadd.f32 %v121_v59, %v90_v58  ;;  %v89_v1 = vmul.f32 %v504_v36, %v57_v60  ;;  %v292_v58 = vld [vmem:[%s761_s5 + $0x18] sm:$0xff]  ;;  %v293_v59 = vld [vmem:[%s761_s5 + $0x20] sm:$0xff] }
  0x93   :  { %v154_v62 = vmax.f32 %v146_v61, 0.0 }
  0x95   :  { %252 = vmatpush.msra.mxu0 %v154_v62  ;;  %487 = vmatpush.msra.mxu3 %v154_v62 }
  0x98   :  { %v116_v2 = vpop.permute.xlu0 %115  ;;  %v47_v6 = vpop.permute.xlu1 %46 }
  0x99   :  { %v145_v4 = vadd.f32 %v116_v2, %v89_v1  ;;  %v87_v8 = vmul.f32 %v504_v36, %v47_v6  ;;  %v193_v36 = vpop.permute.xlu2 %192 }
  0x9b   :  { %v153_v5 = vmax.f32 %v145_v4, 0.0 }
  0x9d   :  { %253 = vmatpush.msra.mxu0 %v153_v5  ;;  %488 = vmatpush.msra.mxu3 %v153_v5 }
  0x9f   :  { %254 = vmatpush.msra.mxu0 %v152_v7  ;;  %489 = vmatpush.msra.mxu3 %v152_v7 }
  0xa0   :  { %v106_v9 = vpop.permute.xlu0 %105  ;;  %v213_v24 = vpop.permute.xlu1 %212 }
  0xa1   :  { %v143_v10 = vadd.f32 %v106_v9, %v87_v8  ;;  %v178_v47 = vpop.permute.xlu2 %177 }
  0xa3   :  { %v151_v11 = vmax.f32 %v143_v10, 0.0 }
  0xa5   :  { %255 = vmatpush.msra.mxu0 %v151_v11  ;;  %490 = vmatpush.msra.mxu3 %v151_v11 }
  0xa6   :  { %466 = vmatmul.msk.f32.vlgmr.msra.gmra.mxu0 %vm215_vm0, %v159_v12  ;;  %471 = vmatmul.msk.f32.vlgmr.msra.gmra.mxu3 %vm215_vm0, %v164_v13 }
  0xa8   :  { %v203_v30 = vpop.permute.xlu0 %202  ;;  %v198_v34 = vpop.permute.xlu1 %197 }
  0xa9   :  { %v333_v6 = vpop.permute.xlu2 %332 }
  0xae   :  { %467 = vmatmul.msk.f32.gmra.mxu0 %vm215_vm0, %v160_v14  ;;  %472 = vmatmul.msk.f32.gmra.mxu3 %vm215_vm0, %v165_v15 }
  0xb0   :  { %v188_v41 = vpop.permute.xlu0 %187  ;;  %v183_v44 = vpop.permute.xlu1 %182 }
  0xb6   :  { %468 = vmatmul.msk.f32.gmra.mxu0 %vm215_vm0, %v161_v16  ;;  %473 = vmatmul.msk.f32.gmra.mxu3 %vm215_vm0, %v166_v17  ;;  %v318_v17 = vpop.permute.xlu2 %317 }
  0xb8   :  { %v343_v0 = vpop.permute.xlu0 %342  ;;  %v338_v2 = vpop.permute.xlu1 %337 }
  0xbe   :  { %469 = vmatmul.msk.f32.gmra.mxu0 %vm215_vm0, %v162_v18 }
  0xc0   :  { %v328_v10 = vpop.permute.xlu0 %327  ;;  %v323_v12 = vpop.permute.xlu1 %322 }
  0xc6   :  { %470 = vmatmul.msk.f32.gmra.mxu0 %vm215_vm0, %v163_v19 }
 0x123   :  { %v257_v20 = vpop.f32.mrf.mxu0 }
 0x124   :  { %v258_v48 = vadd.f32 %v257_v20, %v178_v47  ;;  %v313_v20 = vpop.permute.xlu0 %312 }
 0x126   :  { %v281_v51 = vmax.f32 %v258_v48, 0.0 }
 0x129   :  { %v272_v21 = vpop.f32.mrf.mxu3 }
 0x12a   :  { %v273_v32 = vadd.f32 %v272_v21, %v203_v30 }
 0x12b   :  { %v260_v22 = vpop.f32.mrf.mxu0 }
 0x12c   :  { %v286_v37 = vmax.f32 %v273_v32, 0.0  ;;  %v261_v45 = vadd.f32 %v260_v22, %v183_v44 }
 0x12e   :  { %v282_v50 = vmax.f32 %v261_v45, 0.0 }
 0x131   :  { %v275_v23 = vpop.f32.mrf.mxu3 }
 0x132   :  { %v276_v28 = vadd.f32 %v275_v23, %v208_v26  ;;  %v308_v23 = vpop.permute.xlu1 %307 }
 0x133   :  { %v263_v25 = vpop.f32.mrf.mxu0 }
 0x134   :  { %v287_v35 = vmax.f32 %v276_v28, 0.0  ;;  %v264_v42 = vadd.f32 %v263_v25, %v188_v41  ;;  %v418_v28 = vld [vmem:[%s763_s7] sm:$0x1] }
 0x136   :  { %v283_v49 = vmax.f32 %v264_v42, 0.0 }
 0x139   :  { %v278_v27 = vpop.f32.mrf.mxu3 }
 0x13a   :  { %v279_v29 = vadd.f32 %v278_v27, %v213_v24 }
 0x13b   :  { %v266_v31 = vpop.f32.mrf.mxu0 }
 0x13c   :  { %v288_v33 = vmax.f32 %v279_v29, 0.0  ;;  %v267_v39 = vadd.f32 %v266_v31, %v193_v36  ;;  %v423_v29 = vpop.permute.xlu2 %422 }
 0x13d   :  { %v425_v30 = vperm.slane %v423_v29, 0 }
 0x13e   :  { %377 = vmatpush.msra.mxu1 %v288_v33  ;;  %491 = vmatpush.msra.mxu2 %v288_v33  ;;  %v284_v46 = vmax.f32 %v267_v39, 0.0 }
 0x140   :  { %378 = vmatpush.msra.mxu1 %v287_v35  ;;  %492 = vmatpush.msra.mxu2 %v287_v35 }
 0x142   :  { %379 = vmatpush.msra.mxu1 %v286_v37  ;;  %493 = vmatpush.msra.mxu2 %v286_v37 }
 0x143   :  { %v269_v38 = vpop.f32.mrf.mxu0 }
 0x144   :  { %v270_v40 = vadd.f32 %v269_v38, %v198_v34 }
 0x146   :  { %v285_v43 = vmax.f32 %v270_v40, 0.0 }
 0x148   :  { %380 = vmatpush.msra.mxu1 %v285_v43  ;;  %494 = vmatpush.msra.mxu2 %v285_v43 }
 0x14a   :  { %381 = vmatpush.msra.mxu1 %v284_v46  ;;  %495 = vmatpush.msra.mxu2 %v284_v46 }
 0x14c   :  { %382 = vmatpush.msra.mxu1 %v283_v49  ;;  %496 = vmatpush.msra.mxu2 %v283_v49 }
 0x14e   :  { %383 = vmatpush.msra.mxu1 %v282_v50  ;;  %497 = vmatpush.msra.mxu2 %v282_v50 }
 0x150   :  { %384 = vmatpush.msra.mxu1 %v281_v51  ;;  %498 = vmatpush.msra.mxu2 %v281_v51 }
 0x151   :  { %474 = vmatmul.msk.f32.vlgmr.msra.gmra.mxu1 %vm215_vm0, %v289_v52  ;;  %479 = vmatmul.msk.f32.vlgmr.msra.gmra.mxu2 %vm215_vm0, %v294_v53 }
 0x159   :  { %475 = vmatmul.msk.f32.gmra.mxu1 %vm215_vm0, %v290_v54  ;;  %480 = vmatmul.msk.f32.gmra.mxu2 %vm215_vm0, %v295_v55 }
 0x161   :  { %476 = vmatmul.msk.f32.gmra.mxu1 %vm215_vm0, %v291_v56  ;;  %481 = vmatmul.msk.f32.gmra.mxu2 %vm215_vm0, %v296_v57 }
 0x169   :  { %477 = vmatmul.msk.f32.gmra.mxu1 %vm215_vm0, %v292_v58 }
 0x171   :  { %478 = vmatmul.msk.f32.gmra.mxu1 %vm215_vm0, %v293_v59 }
 0x1ce   :  { %v386_v60 = vpop.f32.mrf.mxu1 }
 0x1cf   :  { %v387_v24 = vadd.f32 %v386_v60, %v308_v23 }
 0x1d1   :  { %v410_v27 = vmax.f32 %v387_v24, 0.0 }
 0x1d4   :  { %v401_v61 = vpop.f32.mrf.mxu2 }
 0x1d5   :  { %v402_v8 = vadd.f32 %v401_v61, %v333_v6 }
 0x1d6   :  { %v389_v62 = vpop.f32.mrf.mxu1 }
 0x1d7   :  { %v415_v13 = vmax.f32 %v402_v8, 0.0  ;;  %v390_v21 = vadd.f32 %v389_v62, %v313_v20 }
 0x1d9   :  { %v411_v26 = vmax.f32 %v390_v21, 0.0 }
 0x1dc   :  { %v404_v63 = vpop.f32.mrf.mxu2 }
 0x1dd   :  { %v405_v4 = vadd.f32 %v404_v63, %v338_v2 }
 0x1de   :  { %v392_v1 = vpop.f32.mrf.mxu1 }
 0x1df   :  { %v416_v11 = vmax.f32 %v405_v4, 0.0  ;;  %v393_v18 = vadd.f32 %v392_v1, %v318_v17 }
 0x1e1   :  { %v412_v25 = vmax.f32 %v393_v18, 0.0 }
 0x1e4   :  { %v407_v3 = vpop.f32.mrf.mxu2 }
 0x1e5   :  { %v408_v5 = vadd.f32 %v407_v3, %v343_v0 }
 0x1e6   :  { %v395_v7 = vpop.f32.mrf.mxu1 }
 0x1e7   :  { %v417_v9 = vmax.f32 %v408_v5, 0.0  ;;  %v396_v15 = vadd.f32 %v395_v7, %v323_v12 }
 0x1e9   :  { %437 = vmatpush.msrb.mxu2 %v417_v9  ;;  %v413_v22 = vmax.f32 %v396_v15, 0.0 }
 0x1eb   :  { %438 = vmatpush.msrb.mxu2 %v416_v11 }
 0x1ed   :  { %439 = vmatpush.msrb.mxu2 %v415_v13 }
 0x1ee   :  { %v398_v14 = vpop.f32.mrf.mxu1 }
 0x1ef   :  { %v399_v16 = vadd.f32 %v398_v14, %v328_v10 }
 0x1f1   :  { %v414_v19 = vmax.f32 %v399_v16, 0.0 }
 0x1f3   :  { %440 = vmatpush.msrb.mxu2 %v414_v19 }
 0x1f5   :  { %441 = vmatpush.msrb.mxu2 %v413_v22 }
 0x1f7   :  { %442 = vmatpush.msrb.mxu2 %v412_v25 }
 0x1f9   :  { %443 = vmatpush.msrb.mxu2 %v411_v26 }
 0x1fb   :  { %444 = vmatpush.msrb.mxu2 %v410_v27 }
 0x1fc   :  { %482 = vmatmul.msk.f32.vlgmr.msrb.gmra.mxu2 %vm215_vm0, %v418_v28 }
 0x27f   :  { %v446_v31 = vpop.f32.mrf.mxu2 }
 0x280   :  { %v447_v32 = vadd.f32 %v446_v31, %v425_v30 }
 0x282   :  { %449 = vst [vmem:[#allocation3] sm:$0x1] %v447_v32 }
 0x283   :  { %460 = dma.vmem_to_hbm [thread:$0]  %s456_s10, 16, %s458_s13, [#allocation4]  }
 0x284   :  { %529 = dma.done.wait [#allocation4], 16  }
 0x285   :  { %530 = vsyncadd [#allocation4], 4294967280 }
 0x286   :  { %465 = vsyncpa [#allocation4], 1 }

</bundles_post_ra>
